<compile_context>
chip_gen: v7x
topology: tpu7x:2x2x1
jax: 0.10.0
libtpu: 0.0.40
codegen_flags: <defaults>
</compile_context>

<pallas_src>
import functools

import jax
import jax.numpy as jnp
from jax.experimental import pallas as pl
from jax.experimental.pallas import tpu as pltpu


def _lsr_rows_kernel(x_ref, t_ref, out_ref, *, e, targets_resident):
    """Per-row smoothed-CE loss for one (TB, C) tile, written as (TB, 1) f32."""
    x = x_ref[...].astype(jnp.float32)            # (TB, C) upcast in-kernel
    tb, C = x.shape

    if targets_resident:
        # Targets live in VMEM for the whole kernel; slice this tile's rows.
        r0 = pl.multiple_of(pl.program_id(0) * tb, tb)
        t = t_ref[pl.ds(r0, tb), :]               # (TB, 1) int32
    else:
        t = t_ref[...]                            # (TB, 1) int32 block

    denom = max(C - 1, 1)                 # guard C == 1 (PyTorch divides by 0)
    base = e / denom                      # smoothing mass on every class
    w_tgt = (1.0 - e) + base              # weight on the target class
    s_total = (1.0 - e) + C * base        # sum_c smoothed[i, c] (row constant)

    # Row-wise log-sum-exp pieces (XLU row reductions, no logp materialized).
    m = jnp.max(x, axis=1, keepdims=True)                       # (TB, 1)
    z = x - m
    lse = jnp.log(jnp.sum(jnp.exp(z), axis=1, keepdims=True))   # (TB, 1)

    # Fused class reduction: sum_c z[i, c] * smoothed[i, c] in ONE select+reduce
    # (replaces the separate sum_z and z_target reductions).
    col = jax.lax.broadcasted_iota(jnp.int32, (tb, C), 1)
    w = jnp.where(col == t, jnp.float32(w_tgt), jnp.float32(base))
    s_zw = jnp.sum(z * w, axis=1, keepdims=True)                # (TB, 1)

    # loss_i = sum_c(-logp * smoothed) = S_total * lse_i - sum_c z * smoothed.
    out_ref[...] = jnp.float32(s_total) * lse - s_zw


def _round_up(a, m):
    return ((a + m - 1) // m) * m


def _vmem_budget():
    """(scoped vmem limit, working-set budget) tuned per chip generation."""
    limit = 32 * 1024 * 1024       # safe on v7x (64 MiB physical VMEM per TC)
    budget = 20 * 1024 * 1024
    try:
        info = pltpu.get_tpu_info()
        cap = getattr(info, "vmem_capacity_bytes", None)
        if cap is not None and cap >= 96 * 1024 * 1024:
            # v5e / v6e: 128 MiB physical -> allow bigger tiles for large C.
            limit = 64 * 1024 * 1024
            budget = 44 * 1024 * 1024
    except Exception:
        pass
    return limit, budget


def _pick_block_rows(B, C, itemsize, pack, budget_bytes):
    """Largest row tile (multiple of the dtype sublane packing) whose live set
    (~6 32-bit temps per element + double-buffered input) fits the budget."""
    per_row = C * (6 * 4 + 2 * itemsize)
    max_rows = max(pack, budget_bytes // max(per_row, 1))
    max_rows = max(pack, (max_rows // pack) * pack)
    tb = min(max_rows, 2048)                      # cap per-step latency
    tb = min(tb, _round_up(B, pack))              # no point exceeding the batch
    return max(pack, (tb // pack) * pack)


def lsr_loss(x, target, e=0.1, reduction="mean", block_rows=None):
    """x: (B, C) float logits (f32/bf16/...), target: (B,) integer class ids."""
    if x.ndim < 2:
        raise ValueError("Expected input tensor to have at least 2 dimensions "
                         f"(got {x.shape})")
    if x.ndim != 2:
        raise ValueError(f"Only 2 dimension tensors are implemented (got {x.shape})")
    if x.shape[0] != target.shape[0]:
        raise ValueError(f"Expected input batchsize ({x.shape[0]}) to match "
                         f"target batch_size ({target.shape[0]})")
    if reduction not in ("none", "sum", "mean"):
        raise ValueError("unrecognized option, expect reduction to be one of "
                         "none, mean, sum")

    B, C = x.shape
    itemsize = jnp.dtype(x.dtype).itemsize
    pack = {4: 8, 2: 16, 1: 32}.get(itemsize, 8)  # sublane packing per dtype
    vmem_limit, budget = _vmem_budget()

    if block_rows is not None:
        TB = max(pack, _round_up(int(block_rows), pack))
    else:
        TB = _pick_block_rows(B, C, itemsize, pack, budget)

    # Pad the batch up to a multiple of TB (padded rows are sliced away below),
    # instead of falling back to a single giant (B, C) block.
    Bp = _round_up(B, TB)
    x_p = x if Bp == B else jnp.pad(x, ((0, Bp - B), (0, 0)))
    t_p = target.astype(jnp.int32)
    if Bp != B:
        t_p = jnp.pad(t_p, (0, Bp - B))
    t2d = t_p.reshape(Bp, 1)

    # Keep targets resident in VMEM (single DMA) when their padded footprint is
    # small; otherwise stream them per tile like the logits.
    targets_resident = Bp * 512 <= 2 * 1024 * 1024   # (Bp,1) i32 -> Bp*512 B in VMEM
    if targets_resident:
        t_spec = pl.BlockSpec((Bp, 1), lambda i: (0, 0))
    else:
        t_spec = pl.BlockSpec((TB, 1), lambda i: (i, 0))

    grid = (pl.cdiv(Bp, TB),)
    kernel = functools.partial(_lsr_rows_kernel, e=float(e),
                               targets_resident=targets_resident)

    out = pl.pallas_call(
        kernel,
        out_shape=jax.ShapeDtypeStruct((Bp, 1), jnp.float32),
        grid=grid,
        in_specs=[
            pl.BlockSpec((TB, C), lambda i: (i, 0)),
            t_spec,
        ],
        out_specs=pl.BlockSpec((TB, 1), lambda i: (i, 0)),
        compiler_params=pltpu.CompilerParams(
            dimension_semantics=("parallel",),   # megacore-shardable on v7x
            vmem_limit_bytes=vmem_limit),
    )(x_p, t2d)

    loss = out[:B, 0]                            # drop padded rows
    if reduction == "none":
        return loss
    total = jnp.sum(loss)
    if reduction == "sum":
        return total
    return total / B                             # mean over the TRUE batch size


def _lsr_ref(x, target, e=0.1, reduction="mean"):
    B, C = x.shape
    one_hot = jax.nn.one_hot(target, C, dtype=jnp.float32) * (1.0 - e)
    smoothed = one_hot + e / (C - 1)
    logp = jax.nn.log_softmax(x.astype(jnp.float32), axis=1)
    loss = jnp.sum(-logp * smoothed, axis=1)
    if reduction == "none":
        return loss
    if reduction == "sum":
        return jnp.sum(loss)
    return jnp.mean(loss)


if __name__ == "__main__":
    key = jax.random.PRNGKey(0)
    kx, kt = jax.random.split(key)
    B, C = 32, 128
    x = jax.random.normal(kx, (B, C), dtype=jnp.float32)
    target = jax.random.randint(kt, (B,), 0, C, dtype=jnp.int32)

    # mean / sum / none with auto tile sizing (single-tile grid).
    for red in ("mean", "sum", "none"):
        out = jax.block_until_ready(lsr_loss(x, target, e=0.1, reduction=red))
        ref = _lsr_ref(x, target, e=0.1, reduction=red)
        assert jnp.allclose(out, ref, atol=1e-5, rtol=1e-5), (red, out, ref)

    # Multi-tile parallel grid (grid=(4,)) + resident-target slicing.
    for red in ("mean", "sum", "none"):
        out = jax.block_until_ready(
            lsr_loss(x, target, e=0.1, reduction=red, block_rows=8))
        ref = _lsr_ref(x, target, e=0.1, reduction=red)
        assert jnp.allclose(out, ref, atol=1e-5, rtol=1e-5), (red, out, ref)

    # Ragged batch (B=30 not a multiple of the tile) -> padded grid.
    Br = 30
    xr, tr = x[:Br], target[:Br]
    for red in ("mean", "sum", "none"):
        out = jax.block_until_ready(
            lsr_loss(xr, tr, e=0.1, reduction=red, block_rows=8))
        ref = _lsr_ref(xr, tr, e=0.1, reduction=red)
        assert jnp.allclose(out, ref, atol=1e-5, rtol=1e-5), (red, out, ref)

    # bf16 logits streamed as-is (in-kernel f32 upcast), 16-row sublane packing.
    xb = x.astype(jnp.bfloat16)
    out = jax.block_until_ready(
        lsr_loss(xb, target, e=0.1, reduction="mean", block_rows=16))
    ref = _lsr_ref(xb, target, e=0.1, reduction="mean")
    assert jnp.allclose(out, ref, atol=1e-4, rtol=1e-4), (out, ref)

    print("KERNEL_OK")
</pallas_src>

<mosaic_0001>
module attributes {stable_mosaic.version = 11 : i64} {
  func.func @_lsr_rows_kernel(%arg0: i32, %arg1: memref<32x128xf32, #tpu.memory_space<vmem>>, %arg2: memref<32x1xi32, #tpu.memory_space<vmem>>, %arg3: memref<32x1xf32, #tpu.memory_space<vmem>>) attributes {dimension_semantics = [#tpu.dimension_semantics<parallel>], iteration_bounds = array<i64: 1>, scalar_prefetch = 0 : i64, scratch_operands = 0 : i64, tpu.core_type = #tpu.core_type<tc>, window_params = [{transform_indices = @transform_0, window_bounds = array<i64: 32, 128>}, {pipeline_mode = #tpu.pipeline_mode<synchronous>, transform_indices = @transform_1, window_bounds = array<i64: 32, 1>}, {transform_indices = @transform_2, window_bounds = array<i64: 32, 1>}]} {
    %c0 = arith.constant 0 : index
    %c0_0 = arith.constant 0 : index
    %0 = vector.load %arg1[%c0, %c0_0] : memref<32x128xf32, #tpu.memory_space<vmem>>, vector<32x128xf32>
    %c32_i32 = arith.constant 32 : i32
    %1 = arith.muli %arg0, %c32_i32 : i32
    %2 = tpu.assume_multiple %1, 32 : i32
    %3 = arith.index_cast %2 : i32 to index
    %c0_1 = arith.constant 0 : index
    %4 = vector.load %arg2[%3, %c0_1] : memref<32x1xi32, #tpu.memory_space<vmem>>, vector<32x1xi32>
    %cst = arith.constant dense<0xFF800000> : vector<32xf32>
    %5 = vector.multi_reduction <maximumf>, %0, %cst [1] : vector<32x128xf32> to vector<32xf32>
    %6 = vector.shape_cast %5 : vector<32xf32> to vector<32x1xf32>
    %7 = vector.broadcast %6 : vector<32x1xf32> to vector<32x128xf32>
    %8 = arith.subf %0, %7 : vector<32x128xf32>
    %9 = math.exp %8 : vector<32x128xf32>
    %cst_2 = arith.constant dense<0.000000e+00> : vector<32xf32>
    %10 = vector.multi_reduction <add>, %9, %cst_2 [1] : vector<32x128xf32> to vector<32xf32>
    %11 = vector.shape_cast %10 : vector<32xf32> to vector<32x1xf32>
    %12 = math.log %11 : vector<32x1xf32>
    %13 = tpu.iota {dimensions = array<i32: 1>} : vector<32x128xi32>
    %14 = vector.broadcast %4 : vector<32x1xi32> to vector<32x128xi32>
    %15 = arith.cmpi eq, %13, %14 : vector<32x128xi32>
    %cst_3 = arith.constant 0.900787413 : f32
    %cst_4 = arith.constant 7.87401571E-4 : f32
    %16 = vector.broadcast %cst_3 : f32 to vector<32x128xf32>
    %17 = vector.broadcast %cst_4 : f32 to vector<32x128xf32>
    %18 = arith.select %15, %16, %17 : vector<32x128xi1>, vector<32x128xf32>
    %19 = arith.mulf %8, %18 : vector<32x128xf32>
    %cst_5 = arith.constant dense<0.000000e+00> : vector<32xf32>
    %20 = vector.multi_reduction <add>, %19, %cst_5 [1] : vector<32x128xf32> to vector<32xf32>
    %21 = vector.shape_cast %20 : vector<32xf32> to vector<32x1xf32>
    %cst_6 = arith.constant 1.00078738 : f32
    %22 = vector.broadcast %cst_6 : f32 to vector<32x1xf32>
    %23 = arith.mulf %22, %12 : vector<32x1xf32>
    %24 = arith.subf %23, %21 : vector<32x1xf32>
    %c0_7 = arith.constant 0 : index
    %c0_8 = arith.constant 0 : index
    %25 = vector.load %arg3[%c0_7, %c0_8] : memref<32x1xf32, #tpu.memory_space<vmem>>, vector<32x1xf32>
    tpu.vector_store %arg3[%c0_7, %c0_8], %24 {strides = array<i32>} : memref<32x1xf32, #tpu.memory_space<vmem>>, vector<32x1xf32>,
    return
  }
  func.func @transform_0(%arg0: i32) -> (i32, i32) {
    %c0_i32 = arith.constant 0 : i32
    %c0_i32_0 = arith.constant 0 : i32
    return %arg0, %c0_i32 : i32, i32
  }
  func.func @transform_1(%arg0: i32) -> (i32, i32) {
    %c0_i32 = arith.constant 0 : i32
    %c0_i32_0 = arith.constant 0 : i32
    %c0_i32_1 = arith.constant 0 : i32
    return %c0_i32, %c0_i32_0 : i32, i32
  }
  func.func @transform_2(%arg0: i32) -> (i32, i32) {
    %c0_i32 = arith.constant 0 : i32
    %c0_i32_0 = arith.constant 0 : i32
    return %arg0, %c0_i32 : i32, i32
  }
}

</mosaic_0001>

<bundles_post_ra>
// kernel: tpu_custom_call.1
= control target key start
LH: loop header
LB: loop body
LE: loop exit
PB: predicated region body
PF: predicated region fallthrough
CT: control target
= control target key end

     0   :  { %v128_v2 = vmov 0   ;;  %v57_v22 = vlaneseq  ;;  %v129_v29 = vmov 0.0007874016   ;;  %vm99_vm4 = vcmask 7168   ;;  %s185_s0 = inlined_call_operand.vmem [shape: f32[32,128], index: 0, kind: input, shape index: {}]   ;;  %s186_s1 = inlined_call_operand.vmem [shape: s32[32,1], index: 1, kind: input, shape index: {}]   ;;  %s187_s2 = inlined_call_operand.vmem [shape: f32[32,1], index: 2, kind: output, shape index: {}]  }
   0x1   :  { %v13_v0 = vld [vmem:[%s185_s0 + $0x10] sm:$0xff]  ;;  %v11_v1 = vld [vmem:[%s185_s0] sm:$0xff]  ;;  %111 = vset.pattern.permute.xlu1 %v128_v2  ;;  %110 = vset.pattern.permute.xlu0 %v128_v2  ;;  %v14_v3 = vld [vmem:[%s185_s0 + $0x18] sm:$0xff] }
   0x2   :  { %25 = vmax.xlane.f32.xlu1 %v13_v0  ;;  %21 = vmax.xlane.f32.xlu0 %v11_v1  ;;  %v12_v4 = vld [vmem:[%s185_s0 + $0x8] sm:$0xff]  ;;  %v19_v6 = vld [vmem:[%s186_s1 + $0x10] sm:$0xff]  ;;  %v17_v7 = vld [vmem:[%s186_s1] sm:$0xff]  ;;  %v58_v24 = vand.u32 127, %v57_v22 }
   0x3   :  { %v18_v5 = vld [vmem:[%s186_s1 + $0x8] sm:$0xff]  ;;  %v20_v8 = vld [vmem:[%s186_s1 + $0x18] sm:$0xff] }
   0x6   :  { %27 = vmax.xlane.f32.xlu1 %v14_v3  ;;  %23 = vmax.xlane.f32.xlu0 %v12_v4 }
  0x17   :  { %63 = vperm.xlu1 %111, %v18_v5  }
  0x1b   :  { %66 = vperm.xlu1 %111, %v19_v6  }
  0x1c   :  { %60 = vperm.xlu0 %110, %v17_v7  }
  0x1f   :  { %69 = vperm.xlu1 %111, %v20_v8  }
  0x8f   :  { %v26_v9 = vpop.xlane.xlu1 %25  ;;  %v22_v10 = vpop.xlane.xlu0 %21 }
  0x90   :  { %v31_v11 = vsub.f32 %v13_v0, %v26_v9  ;;  %v29_v12 = vsub.f32 %v11_v1, %v22_v10 }
  0x92   :  { %v33_v13 = vmul.f32 1.442695, %v29_v12  ;;  %v37_v14 = vmul.f32 1.442695, %v31_v11 }
  0x93   :  { %v28_v15 = vpop.xlane.xlu1 %27  ;;  %v24_v16 = vpop.xlane.xlu0 %23 }
  0x94   :  { %v32_v17 = vsub.f32 %v14_v3, %v28_v15  ;;  %v30_v18 = vsub.f32 %v12_v4, %v24_v16  ;;  %112 = vpow2.f32 %v33_v13 }
  0x95   :  { %114 = vpow2.f32 %v37_v14 }
  0x96   :  { %v35_v19 = vmul.f32 1.442695, %v30_v18  ;;  %v39_v20 = vmul.f32 1.442695, %v32_v17 }
  0x97   :  { %v64_v21 = vpop.permute.xlu1 %63 }
  0x98   :  { %116 = vpow2.f32 %v35_v19  ;;  %vm72_vm2 = vcmp.eq.s32.totalorder %v58_v24, %v64_v21 }
  0x99   :  { %118 = vpow2.f32 %v39_v20  ;;  %v76_v36 = vsel %vm72_vm2, 0.9007874, %v129_v29 }
  0x9a   :  { %v80_v37 = vmul.f32 %v76_v36, %v30_v18 }
  0x9b   :  { %v67_v23 = vpop.permute.xlu1 %66  ;;  %v61_v27 = vpop.permute.xlu0 %60 }
  0x9c   :  { %vm73_vm0 = vcmp.eq.s32.totalorder %v58_v24, %v67_v23  ;;  %vm71_vm1 = vcmp.eq.s32.totalorder %v58_v24, %v61_v27 }
  0x9d   :  { %v77_v30 = vsel %vm73_vm0, 0.9007874, %v129_v29  ;;  %v75_v33 = vsel %vm71_vm1, 0.9007874, %v129_v29 }
  0x9e   :  { %v113_v25 = vpop.eup %112  ;;  %v81_v32 = vmul.f32 %v77_v30, %v31_v11  ;;  %v79_v35 = vmul.f32 %v75_v33, %v29_v12 }
  0x9f   :  { %41 = vadd.xlane.f32.xlu1 %v113_v25  ;;  %v115_v26 = vpop.eup %114  ;;  %v70_v34 = vpop.permute.xlu1 %69 }
  0xa0   :  { %vm74_vm3 = vcmp.eq.s32.totalorder %v58_v24, %v70_v34 }
  0xa1   :  { %v78_v38 = vsel %vm74_vm3, 0.9007874, %v129_v29 }
  0xa2   :  { %v117_v28 = vpop.eup %116  ;;  %v82_v39 = vmul.f32 %v78_v38, %v32_v17 }
  0xa3   :  { %45 = vadd.xlane.f32.xlu1 %v115_v26  ;;  %43 = vadd.xlane.f32.xlu0 %v117_v28  ;;  %v119_v31 = vpop.eup %118 }
  0xa7   :  { %47 = vadd.xlane.f32.xlu1 %v119_v31  ;;  %87 = vadd.xlane.f32.xlu0 %v81_v32 }
  0xab   :  { %83 = vadd.xlane.f32.xlu1 %v79_v35 }
  0xaf   :  { %85 = vadd.xlane.f32.xlu1 %v80_v37 }
  0xb3   :  { %89 = vadd.xlane.f32.xlu1 %v82_v39 }
 0x12c   :  { %v42_v40 = vpop.xlane.xlu1 %41 }
 0x12d   :  { %120 = vlog2.f32 %v42_v40 }
 0x130   :  { %v46_v41 = vpop.xlane.xlu1 %45  ;;  %v44_v42 = vpop.xlane.xlu0 %43 }
 0x131   :  { %122 = vlog2.f32 %v46_v41 }
 0x132   :  { %124 = vlog2.f32 %v44_v42 }
 0x134   :  { %v48_v43 = vpop.xlane.xlu1 %47  ;;  %v88_v56 = vpop.xlane.xlu0 %87 }
 0x135   :  { %126 = vlog2.f32 %v48_v43 }
 0x137   :  { %v121_v44 = vpop.eup %120 }
 0x138   :  { %v50_v45 = vmul.f32 0.6931472, %v121_v44  ;;  %v84_v46 = vpop.xlane.xlu1 %83 }
 0x13a   :  { %v91_v47 = vmul.f32 1.0007874, %v50_v45 }
 0x13b   :  { %v123_v48 = vpop.eup %122 }
 0x13c   :  { %v125_v49 = vpop.eup %124  ;;  %v54_v50 = vmul.f32 0.6931472, %v123_v48  ;;  %v95_v51 = vsub.f32 %v91_v47, %v84_v46  ;;  %v86_v52 = vpop.xlane.xlu1 %85 }
 0x13d   :  { %v52_v53 = vmul.f32 0.6931472, %v125_v49 }
 0x13e   :  { %v93_v54 = vmul.f32 1.0007874, %v54_v50  ;;  %100 = vst.msk [vmem:[%s187_s2] sm:$0xff] %vm99_vm4, %v95_v51 }
 0x13f   :  { %v127_v55 = vpop.eup %126  ;;  %v92_v57 = vmul.f32 1.0007874, %v52_v53 }
 0x140   :  { %v97_v58 = vsub.f32 %v93_v54, %v88_v56  ;;  %v56_v59 = vmul.f32 0.6931472, %v127_v55  ;;  %v90_v62 = vpop.xlane.xlu1 %89 }
 0x141   :  { %v96_v60 = vsub.f32 %v92_v57, %v86_v52 }
 0x142   :  { %102 = vst.msk [vmem:[%s187_s2 + $0x10] sm:$0xff] %vm99_vm4, %v97_v58  ;;  %v94_v61 = vmul.f32 1.0007874, %v56_v59 }
 0x143   :  { %101 = vst.msk [vmem:[%s187_s2 + $0x8] sm:$0xff] %vm99_vm4, %v96_v60 }
 0x144   :  { %v98_v63 = vsub.f32 %v94_v61, %v90_v62 }
 0x146   :  { %103 = vst.msk [vmem:[%s187_s2 + $0x18] sm:$0xff] %vm99_vm4, %v98_v63 }

</bundles_post_ra>
